<compile_context>
chip_gen: v7x
topology: tpu7x:2x2x1
jax: 0.10.0
libtpu: 0.0.40
codegen_flags: <defaults>
</compile_context>

<pallas_src>
import jax
import jax.numpy as jnp
from jax.experimental import pallas as pl
from jax.experimental.pallas import tpu as pltpu

# ---------------- module hyper-params ----------------
DIM = 32
MULTIPLE_OF = 32
BATCH = 2
SEQ = 8

# hidden dim computed exactly as the PyTorch module's __init__ (ffn_dim_multiplier=None)
_hidden = 4 * DIM
_hidden = int(2 * _hidden / 3)
FFN_DIM = MULTIPLE_OF * ((_hidden + MULTIPLE_OF - 1) // MULTIPLE_OF)   # 96

LANE = 128


# ---------------- Pallas kernel ----------------
def _make_ffn_kernel(f_pad):
    def ffn_kernel(x_ref, w13_ref, w2_ref, o_ref):
        x = x_ref[...]                                            # (TM, D)
        # single fused matmul for gate|up (one MXU push instead of two);
        # gate/up slices are lane-aligned because f_pad is a multiple of 128.
        gu = jnp.dot(x, w13_ref[...], preferred_element_type=jnp.float32)
        g = gu[:, :f_pad]
        u = gu[:, f_pad:]
        # exact silu via a single EUP push: sigmoid(g) = 0.5*tanh(0.5*g) + 0.5
        silu = g * (0.5 * jnp.tanh(0.5 * g) + 0.5)
        # lane-dense (TM, 128) output block -> unmasked vector stores
        o_ref[...] = jnp.dot(silu * u, w2_ref[...],
                             preferred_element_type=jnp.float32
                             ).astype(o_ref.dtype)
    return ffn_kernel


# ---------------- one-time weight preparation (hoisted out of forward) ----------------
def prepare_ffn_weights(w1, w2, w3):
    """Fuse w1|w3 and pad to lane-dense shapes.  Call ONCE at weight load time.

    Returns:
      w13  : (d, 2*f_pad)   fused gate|up weight, hidden dim padded to 128 lanes
      w2p  : (f_pad, d_pad)  down-projection, output dim padded to 128 lanes
    Padded lanes/rows are zero, so they contribute exactly 0 to the result.
    At real LLaMA dims also cast these (and x) to bf16 for MXU peak.
    """
    d, f = w1.shape
    f_pad = ((f + LANE - 1) // LANE) * LANE
    d_pad = ((d + LANE - 1) // LANE) * LANE
    fp, dp = f_pad - f, d_pad - d
    w13 = jnp.concatenate(
        [jnp.pad(w1, ((0, 0), (0, fp))), jnp.pad(w3, ((0, 0), (0, fp)))],
        axis=1)                                 # (d, 2*f_pad)
    w2p = jnp.pad(w2, ((0, fp), (0, dp)))       # (f_pad, d_pad)
    return w13, w2p


# ---------------- forward wrapper ----------------
def feed_forward_fused(x, w13, w2p, *, row_tile=None):
    """x: (..., dim); w13/w2p from prepare_ffn_weights().

    row_tile: rows per grid step.  Default = all rows (single step) — correct
    choice on single-TC v5e/v6e and for small batches on v7x.  Only pass
    row_tile = m // 2 on dual-TC v7x once each core gets >= ~128 rows.
    """
    orig_shape = x.shape
    d = orig_shape[-1]
    x2 = x.reshape(-1, d)                       # flatten batch*seq -> rows
    m = x2.shape[0]
    two_f_pad = w13.shape[1]
    f_pad = two_f_pad // 2
    d_pad = w2p.shape[1]

    if row_tile is None:
        row_tile = m
    assert m % row_tile == 0

    out = pl.pallas_call(
        _make_ffn_kernel(f_pad),
        out_shape=jax.ShapeDtypeStruct((m, d_pad), x.dtype),
        grid=(m // row_tile,),
        in_specs=[
            pl.BlockSpec((row_tile, d), lambda i: (i, 0)),      # activations
            # Constant-index resident weights.  At scaled dims, add
            # pipeline_mode=pl.Buffered(1) (single buffer) and a hidden-dim
            # reduction grid axis; unnecessary at a single grid step.
            pl.BlockSpec((d, two_f_pad), lambda i: (0, 0)),     # fused w1|w3
            pl.BlockSpec((f_pad, d_pad), lambda i: (0, 0)),     # padded w2
        ],
        out_specs=pl.BlockSpec((row_tile, d_pad), lambda i: (i, 0)),
        compiler_params=pltpu.CompilerParams(
            dimension_semantics=("parallel",)),
    )(x2, w13, w2p)
    # drop the zero-padded output lanes
    return out[:, :d].reshape(orig_shape)


def feed_forward(x, w1, w2, w3, *, row_tile=None):
    """Convenience path matching the original signature (prep not hoisted)."""
    w13, w2p = prepare_ffn_weights(w1, w2, w3)
    return feed_forward_fused(x, w13, w2p, row_tile=row_tile)


# ---------------- pure-JAX reference (torch-faithful math) ----------------
def reference_ffn(x, w1, w2, w3):
    return (jax.nn.silu(x @ w1) * (x @ w3)) @ w2


# ---------------- main ----------------
if __name__ == "__main__":
    key = jax.random.PRNGKey(0)
    k0, k1, k2, k3 = jax.random.split(key, 4)
    scale = 0.05
    x = jax.random.normal(k0, (BATCH, SEQ, DIM), jnp.float32)
    w1 = jax.random.normal(k1, (DIM, FFN_DIM), jnp.float32) * scale
    w2 = jax.random.normal(k2, (FFN_DIM, DIM), jnp.float32) * scale
    w3 = jax.random.normal(k3, (DIM, FFN_DIM), jnp.float32) * scale

    # weight prep happens once, outside the forward path
    w13, w2p = prepare_ffn_weights(w1, w2, w3)

    out = feed_forward_fused(x, w13, w2p)
    out = jax.block_until_ready(out)

    ref = reference_ffn(x, w1, w2, w3)
    assert out.shape == (BATCH, SEQ, DIM)
    err = float(jnp.max(jnp.abs(out - ref)))
    # exact tanh-form sigmoid -> tight tolerance (no approx reciprocal anymore)
    assert err < 1e-5, err

    print("KERNEL_OK")
</pallas_src>

<mosaic_0001>
module attributes {stable_mosaic.version = 11 : i64} {
  func.func @ffn_kernel(%arg0: i32, %arg1: memref<16x32xf32, #tpu.memory_space<vmem>>, %arg2: memref<32x256xf32, #tpu.memory_space<vmem>>, %arg3: memref<128x128xf32, #tpu.memory_space<vmem>>, %arg4: memref<16x128xf32, #tpu.memory_space<vmem>>) attributes {dimension_semantics = [#tpu.dimension_semantics<parallel>], iteration_bounds = array<i64: 1>, scalar_prefetch = 0 : i64, scratch_operands = 0 : i64, tpu.core_type = #tpu.core_type<tc>, window_params = [{transform_indices = @transform_0, window_bounds = array<i64: 16, 32>}, {pipeline_mode = #tpu.pipeline_mode<synchronous>, transform_indices = @transform_1, window_bounds = array<i64: 32, 256>}, {pipeline_mode = #tpu.pipeline_mode<synchronous>, transform_indices = @transform_2, window_bounds = array<i64: 128, 128>}, {transform_indices = @transform_3, window_bounds = array<i64: 16, 128>}]} {
    %c0 = arith.constant 0 : index
    %c0_0 = arith.constant 0 : index
    %0 = vector.load %arg1[%c0, %c0_0] : memref<16x32xf32, #tpu.memory_space<vmem>>, vector<16x32xf32>
    %c0_1 = arith.constant 0 : index
    %c0_2 = arith.constant 0 : index
    %1 = vector.load %arg2[%c0_1, %c0_2] : memref<32x256xf32, #tpu.memory_space<vmem>>, vector<32x256xf32>
    %cst = arith.constant dense<0.000000e+00> : vector<16x256xf32>
    %2 = tpu.matmul %0, %1, %cst {dimension_numbers = #tpu.dot_dimension_numbers<[1], [0], [0], [1], [0, 0, 1, 1], [], []>} : vector<16x32xf32>, vector<32x256xf32>, vector<16x256xf32> -> vector<16x256xf32>
    %3 = vector.extract_strided_slice %2 {offsets = [0, 0], sizes = [16, 128], strides = [1, 1]} : vector<16x256xf32> to vector<16x128xf32>
    %4 = vector.extract_strided_slice %2 {offsets = [0, 128], sizes = [16, 128], strides = [1, 1]} : vector<16x256xf32> to vector<16x128xf32>
    %cst_3 = arith.constant 5.000000e-01 : f32
    %5 = vector.broadcast %cst_3 : f32 to vector<16x128xf32>
    %6 = arith.mulf %5, %3 : vector<16x128xf32>
    %7 = math.tanh %6 : vector<16x128xf32>
    %cst_4 = arith.constant 5.000000e-01 : f32
    %8 = vector.broadcast %cst_4 : f32 to vector<16x128xf32>
    %9 = arith.mulf %8, %7 : vector<16x128xf32>
    %cst_5 = arith.constant 5.000000e-01 : f32
    %10 = vector.broadcast %cst_5 : f32 to vector<16x128xf32>
    %11 = arith.addf %9, %10 : vector<16x128xf32>
    %12 = arith.mulf %3, %11 : vector<16x128xf32>
    %13 = arith.mulf %12, %4 : vector<16x128xf32>
    %c0_6 = arith.constant 0 : index
    %c0_7 = arith.constant 0 : index
    %14 = vector.load %arg3[%c0_6, %c0_7] : memref<128x128xf32, #tpu.memory_space<vmem>>, vector<128x128xf32>
    %cst_8 = arith.constant dense<0.000000e+00> : vector<16x128xf32>
    %15 = tpu.matmul %13, %14, %cst_8 {dimension_numbers = #tpu.dot_dimension_numbers<[1], [0], [0], [1], [0, 0, 1, 1], [], []>} : vector<16x128xf32>, vector<128x128xf32>, vector<16x128xf32> -> vector<16x128xf32>
    %c0_9 = arith.constant 0 : index
    %c0_10 = arith.constant 0 : index
    %16 = vector.load %arg4[%c0_9, %c0_10] : memref<16x128xf32, #tpu.memory_space<vmem>>, vector<16x128xf32>
    tpu.vector_store %arg4[%c0_9, %c0_10], %15 {strides = array<i32>} : memref<16x128xf32, #tpu.memory_space<vmem>>, vector<16x128xf32>,
    return
  }
  func.func @transform_0(%arg0: i32) -> (i32, i32) {
    %c0_i32 = arith.constant 0 : i32
    %c0_i32_0 = arith.constant 0 : i32
    return %arg0, %c0_i32 : i32, i32
  }
  func.func @transform_1(%arg0: i32) -> (i32, i32) {
    %c0_i32 = arith.constant 0 : i32
    %c0_i32_0 = arith.constant 0 : i32
    %c0_i32_1 = arith.constant 0 : i32
    return %c0_i32, %c0_i32_0 : i32, i32
  }
  func.func @transform_2(%arg0: i32) -> (i32, i32) {
    %c0_i32 = arith.constant 0 : i32
    %c0_i32_0 = arith.constant 0 : i32
    %c0_i32_1 = arith.constant 0 : i32
    return %c0_i32, %c0_i32_0 : i32, i32
  }
  func.func @transform_3(%arg0: i32) -> (i32, i32) {
    %c0_i32 = arith.constant 0 : i32
    %c0_i32_0 = arith.constant 0 : i32
    return %arg0, %c0_i32 : i32, i32
  }
}

</mosaic_0001>

<bundles_post_ra>
// kernel: tpu_custom_call.1
= control target key start
LH: loop header
LB: loop body
LE: loop exit
PB: predicated region body
PF: predicated region fallthrough
CT: control target
= control target key end

     0   :  { %8 = vsyncpa [#allocation3], 0  ;;  %s561_s0 = inlined_call_operand.hbm [shape: f32[16,32], index: 0, kind: input, shape index: {}]   ;;  %s562_s1 = inlined_call_operand.hbm [shape: f32[32,256], index: 1, kind: input, shape index: {}]   ;;  %s563_s2 = inlined_call_operand.hbm [shape: f32[128,128], index: 2, kind: input, shape index: {}]   ;;  %s564_s3 = inlined_call_operand.hbm [shape: f32[16,128], index: 3, kind: output, shape index: {}]  }
   0x1   :  { %9 = vsyncpa [#allocation6], 0 }
   0x2   :  { %10 = vsyncpa [#allocation4], 0  ;;  %s475_s12 = smov [#allocation5]   ;;  %s381_s16 = scalar_lea.hbm %s562_s1, 1024 }
   0x3   :  { %s28_s13 = sshll.u32 %s475_s12, 4  ;;  %p382_p0 = scmp.ne.s32.totalorder %s562_s1, %s381_s16  ;;  %s29_s13 = int_to_ptr.vmem [resolvable:$true] %s28_s13 }
   0x4   :  { %p385_p1 = scmp.lt.u32.totalorder %s381_s16, %s562_s1 }
   0x6   :  { %p387_p2 = pnand %p385_p1, %p382_p0 }
   0x8   :  { %390 = shalt.err (!%p387_p2)
}
   0x9   :  { %s391_s21 = scalar_lea.vmem %s29_s13, 1024  ;;  %p396_p4 = scmp.lt.s32.totalorder %s29_s13, %s29_s13 }
   0xa   :  { %p392_p3 = scmp.ne.s32.totalorder %s29_s13, %s391_s21  ;;  %p397_p5 = scmp.lt.s32.totalorder %s391_s21, %s391_s21 }
   0xc   :  { %p398_p6 = por %p397_p5, %p396_p4 }
   0xe   :  { %p399_p7 = pnand %p398_p6, %p392_p3 }
  0x10   :  { %402 = shalt.err (!%p399_p7)
}
  0x11   :  { %s476_s22 = smov 256   ;;  %s477_s23 = smov 16  }
  0x12   :  { %34 = dma.hbm_to_vmem [thread:$0]  %s562_s1, 1024, %s29_s13, [#allocation6], %s476_s22, %s476_s22, %s477_s23  }
  0x13   :  { %s478_s26 = smov [#allocation2]   ;;  %s403_s30 = scalar_lea.hbm %s561_s0, 256 }
  0x14   :  { %s16_s27 = sshll.u32 %s478_s26, 4  ;;  %p404_p8 = scmp.ne.s32.totalorder %s561_s0, %s403_s30  ;;  %s17_s27 = int_to_ptr.vmem [resolvable:$true] %s16_s27 }
  0x15   :  { %p407_p9 = scmp.lt.u32.totalorder %s403_s30, %s561_s0 }
  0x17   :  { %p409_p10 = pnand %p407_p9, %p404_p8 }
  0x19   :  { %412 = shalt.err (!%p409_p10)
}
  0x1a   :  { %s413_s8 = scalar_lea.vmem %s17_s27, 256  ;;  %p418_p12 = scmp.lt.s32.totalorder %s17_s27, %s17_s27 }
  0x1b   :  { %p414_p11 = scmp.ne.s32.totalorder %s17_s27, %s413_s8  ;;  %p419_p13 = scmp.lt.s32.totalorder %s413_s8, %s413_s8 }
  0x1d   :  { %p420_p0 = por %p419_p13, %p418_p12 }
  0x1f   :  { %p421_p1 = pnand %p420_p0, %p414_p11 }
  0x21   :  { %424 = shalt.err (!%p421_p1)
}
  0x22   :  { %s479_s1 = smov 128   ;;  %s480_s9 = smov 8  }
  0x23   :  { %22 = dma.hbm_to_vmem [thread:$0]  %s561_s0, 256, %s17_s27, [#allocation3], %s479_s1, %s479_s1, %s480_s9  }
  0x24   :  { %s481_s12 = smov [#allocation7]   ;;  %s425_s16 = scalar_lea.hbm %s563_s2, 2048 }
  0x25   :  { %s40_s13 = sshll.u32 %s481_s12, 4  ;;  %p426_p2 = scmp.ne.s32.totalorder %s563_s2, %s425_s16  ;;  %s41_s13 = int_to_ptr.vmem [resolvable:$true] %s40_s13 }
  0x26   :  { %p429_p3 = scmp.lt.u32.totalorder %s425_s16, %s563_s2 }
  0x28   :  { %p431_p4 = pnand %p429_p3, %p426_p2 }
  0x2a   :  { %434 = shalt.err (!%p431_p4)
}
  0x2b   :  { %s435_s21 = scalar_lea.vmem %s41_s13, 2048  ;;  %p440_p6 = scmp.lt.s32.totalorder %s41_s13, %s41_s13 }
  0x2c   :  { %p436_p5 = scmp.ne.s32.totalorder %s41_s13, %s435_s21  ;;  %p441_p7 = scmp.lt.s32.totalorder %s435_s21, %s435_s21 }
  0x2e   :  { %p442_p8 = por %p441_p7, %p440_p6 }
  0x30   :  { %p443_p9 = pnand %p442_p8, %p436_p5 }
  0x32   :  { %446 = shalt.err (!%p443_p9)
}
  0x33   :  { %46 = dma.hbm_to_vmem [thread:$0]  %s563_s2, 2048, %s41_s13, [#allocation6], %s479_s1, %s479_s1, %s480_s9  }
  0x34   :  { %469 = dma.done.wait [#allocation3], 256  }
  0x35   :  { %470 = vsyncadd [#allocation3], 4294967040 }
  0x36   :  { %471 = dma.done.wait [#allocation6], 3072  }
  0x37   :  { %472 = vsyncadd [#allocation6], 4294964224  ;;  %v482_v0 = vmov 0.0   ;;  %v59_v1 = vld [vmem:[#allocation5 + $0x8] sm:$0xff]  ;;  %v61_v2 = vld [vmem:[#allocation5 + $0x18] sm:$0xff]  ;;  %vm66_vm0 = vcmask 261120  }
  0x38   :  { %137 = vmatprep.mubr.f32.mxu0 %v482_v0  ;;  %v58_v3 = vld [vmem:[#allocation5] sm:$0xff]  ;;  %v328_v4 = vpack.c.bf16 %v61_v2, %v59_v1  ;;  %v60_v5 = vld [vmem:[#allocation5 + $0x10] sm:$0xff]  ;;  %v63_v6 = vld [vmem:[#allocation5 + $0x28] sm:$0xff]  ;;  %s483_s2 = smov [#allocation8]  }
  0x39   :  { %v65_v7 = vld [vmem:[#allocation5 + $0x38] sm:$0xff]  ;;  %v330_v8 = vpack.c.bf16 %v60_v5, %v58_v3  ;;  %v62_v10 = vld [vmem:[#allocation5 + $0x20] sm:$0xff]  ;;  %v64_v11 = vld [vmem:[#allocation5 + $0x30] sm:$0xff]  ;;  %s260_s23 = sshll.u32 %s483_s2, 4  ;;  %s261_s23 = int_to_ptr.vmem [resolvable:$true] %s260_s23 }
  0x3a   :  { %v332_v9 = vpack.c.bf16 %v65_v7, %v63_v6  ;;  %329 = vmatprep.subr.bf16.mxu0 %v328_v4  ;;  %v162_v12 = vld [vmem:[#allocation7] sm:$0xff]  ;;  %v163_v13 = vld [vmem:[#allocation7 + $0x8] sm:$0xff]  ;;  %v334_v14 = vpack.c.bf16 %v64_v11, %v62_v10  ;;  %v164_v16 = vld [vmem:[#allocation7 + $0x10] sm:$0xff]  ;;  %s447_s24 = scalar_lea.vmem %s261_s23, 256  ;;  %p452_p11 = scmp.lt.s32.totalorder %s261_s23, %s261_s23 }
  0x3b   :  { %331 = vmatpush1.bf16.msra.mxu0 %v330_v8  ;;  %v336_v15 = vpack.c.bf16 %v163_v13, %v162_v12  ;;  %v165_v17 = vld [vmem:[#allocation7 + $0x18] sm:$0xff]  ;;  %v56_v19 = vld [vmem:[#allocation2] sm:$0xff]  ;;  %v166_v21 = vld [vmem:[#allocation7 + $0x20] sm:$0xff]  ;;  %p448_p10 = scmp.ne.s32.totalorder %s261_s23, %s447_s24  ;;  %p453_p12 = scmp.lt.s32.totalorder %s447_s24, %s447_s24 }
  0x3c   :  { %333 = vmatprep.subr.bf16.mxu0 %v332_v9  ;;  %v340_v18 = vpack.c.bf16 %v165_v17, %v164_v16  ;;  %v57_v20 = vld [vmem:[#allocation2 + $0x8] sm:$0xff]  ;;  %v167_v22 = vld [vmem:[#allocation7 + $0x28] sm:$0xff]  ;;  %v168_v24 = vld [vmem:[#allocation7 + $0x30] sm:$0xff] }
  0x3d   :  { %337 = vmatprep.subr.bf16.mxu1 %v336_v15  ;;  %v344_v23 = vpack.c.bf16 %v167_v22, %v166_v21  ;;  %v169_v25 = vld [vmem:[#allocation7 + $0x38] sm:$0xff]  ;;  %v170_v27 = vld [vmem:[#allocation7 + $0x40] sm:$0xff]  ;;  %v171_v28 = vld [vmem:[#allocation7 + $0x48] sm:$0xff]  ;;  %p454_p13 = por %p453_p12, %p452_p11 }
  0x3e   :  { %339 = vmatpush3.bf16.msra.mxu1 %v336_v15  ;;  %v348_v26 = vpack.c.bf16 %v169_v25, %v168_v24  ;;  %v352_v29 = vpack.c.bf16 %v171_v28, %v170_v27  ;;  %v172_v30 = vld [vmem:[#allocation7 + $0x50] sm:$0xff]  ;;  %v173_v31 = vld [vmem:[#allocation7 + $0x58] sm:$0xff]  ;;  %v174_v33 = vld [vmem:[#allocation7 + $0x60] sm:$0xff] }
  0x3f   :  { %335 = vmatpush1.bf16.msra.mxu0 %v334_v14  ;;  %341 = vmatprep.subr.bf16.mxu1 %v340_v18  ;;  %v356_v32 = vpack.c.bf16 %v173_v31, %v172_v30  ;;  %v175_v34 = vld [vmem:[#allocation7 + $0x68] sm:$0xff]  ;;  %v176_v36 = vld [vmem:[#allocation7 + $0x70] sm:$0xff]  ;;  %v177_v37 = vld [vmem:[#allocation7 + $0x78] sm:$0xff]  ;;  %p455_p0 = pnand %p454_p13, %p448_p10 }
  0x40   :  { %v360_v35 = vpack.c.bf16 %v175_v34, %v174_v33  ;;  %v364_v38 = vpack.c.bf16 %v177_v37, %v176_v36 }
  0x42   :  { %273 = vmatmul.mubr.msk.f32.vlgmr.msra.gmra.mrb[0].mxu0 %vm66_vm0, %v56_v19  ;;  %343 = vmatpush3.bf16.msra.mxu1 %v340_v18 }
  0x43   :  { %143 = vmatprep.mubr.f32.mxu0 %v482_v0  ;;  %345 = vmatprep.subr.bf16.mxu1 %v344_v23 }
  0x46   :  { %274 = vmatmul.mubr.msk.f32.gmra.mrb[2].mxu0 %vm66_vm0, %v57_v20  ;;  %347 = vmatpush3.bf16.msra.mxu1 %v344_v23 }
  0x47   :  { %349 = vmatprep.subr.bf16.mxu1 %v348_v26 }
  0x4a   :  { %351 = vmatpush3.bf16.msra.mxu1 %v348_v26 }
  0x4b   :  { %353 = vmatprep.subr.bf16.mxu1 %v352_v29 }
  0x4e   :  { %355 = vmatpush3.bf16.msra.mxu1 %v352_v29 }
  0x4f   :  { %357 = vmatprep.subr.bf16.mxu1 %v356_v32 }
  0x52   :  { %359 = vmatpush3.bf16.msra.mxu1 %v356_v32 }
  0x53   :  { %361 = vmatprep.subr.bf16.mxu1 %v360_v35 }
  0x56   :  { %363 = vmatpush3.bf16.msra.mxu1 %v360_v35 }
  0x57   :  { %365 = vmatprep.subr.bf16.mxu1 %v364_v38 }
  0x5a   :  { %367 = vmatpush3.bf16.msra.mxu1 %v364_v38 }
 0x115   :  { %v139_v39 = vpop.f32.mrb[0].mxu0 }
 0x116   :  { %v150_v40 = vmul.f32 0.5, %v139_v39  ;;  %v141_v41 = vpop.f32.mrb[1].mxu0 }
 0x118   :  { %377 = vtanh.f32 %v150_v40 }
 0x119   :  { %v145_v42 = vpop.f32.mrb[2].mxu0 }
 0x11a   :  { %v151_v43 = vmul.f32 0.5, %v145_v42  ;;  %v147_v44 = vpop.f32.mrb[3].mxu0 }
 0x11c   :  { %379 = vtanh.f32 %v151_v43 }
 0x122   :  { %v378_v45 = vpop.eup %377 }
 0x123   :  { %v154_v46 = vmul.f32 0.5, %v378_v45 }
 0x125   :  { %v156_v47 = vadd.f32 0.5, %v154_v46 }
 0x126   :  { %v380_v48 = vpop.eup %379 }
 0x127   :  { %v158_v49 = vmul.f32 %v156_v47, %v139_v39  ;;  %v155_v50 = vmul.f32 0.5, %v380_v48 }
 0x129   :  { %v157_v51 = vadd.f32 0.5, %v155_v50  ;;  %v160_v52 = vmul.f32 %v158_v49, %v141_v41 }
 0x12b   :  { %v159_v53 = vmul.f32 %v157_v51, %v145_v42  ;;  %325 = vmatprep.mubr.f32.mxu1 %v160_v52 }
 0x12d   :  { %v161_v54 = vmul.f32 %v159_v53, %v147_v44 }
 0x12f   :  { %326 = vmatmul.mubr.f32.vlgmr.msra.gmra.mrb[0].mxu1 %v161_v54 }
 0x202   :  { %v327_v55 = vpop.f32.mrb[0].mxu1 }
 0x203   :  { %254 = vst [vmem:[#allocation8 + $0x8] sm:$0xff] %v327_v55  ;;  %v244_v56 = vpop.f32.mrb[1].mxu1 }
 0x204   :  { %253 = vst [vmem:[#allocation8] sm:$0xff] %v244_v56 }
 0x205   :  { %458 = shalt.err (!%p455_p0)
}
 0x206   :  { %s459_s27 = scalar_lea.hbm %s564_s3, 256 }
 0x207   :  { %p460_p1 = scmp.ne.s32.totalorder %s564_s3, %s459_s27  ;;  %p463_p2 = scmp.lt.u32.totalorder %s459_s27, %s564_s3 }
 0x209   :  { %p465_p3 = pnand %p463_p2, %p460_p1 }
 0x20b   :  { %468 = shalt.err (!%p465_p3)
}
 0x20c   :  { %266 = dma.vmem_to_hbm [thread:$0]  %s261_s23, 256, %s564_s3, [#allocation4], %s479_s1, %s479_s1, %s480_s9  }
 0x20d   :  { %473 = dma.done.wait [#allocation4], 256  }
 0x20e   :  { %474 = vsyncadd [#allocation4], 4294967040 }
 0x20f   :  { %270 = vsyncpa [#allocation3], 1 }
 0x210   :  { %271 = vsyncpa [#allocation6], 1 }
 0x211   :  { %272 = vsyncpa [#allocation4], 1 }

</bundles_post_ra>
